<compile_context>
chip_gen: v7x
topology: tpu7x:2x2x1
jax: 0.10.0
libtpu: 0.0.40
codegen_flags: <defaults>
</compile_context>

<pallas_src>
import functools

import jax
import jax.numpy as jnp
from jax.experimental import pallas as pl
from jax.experimental.pallas import tpu as pltpu


def _round_up(n, m):
    return ((n + m - 1) // m) * m


# --------------------------------------------------------------------------
# Pallas kernel: fused 2-hidden-layer MLP controller for ONE timestep block
#   h0 = relu(x @ W0x + r @ W0r + b0)          (fused concat)
#   h1 = relu(h0 @ W1 + b1)
#   y  = clip(h1 @ Wo + bo, -clip, clip)
# All matmuls accumulate in f32; MXU operands are cast to the weight dtype
# (bf16 by default); elementwise work stays in f32 (v5e-friendly).
# --------------------------------------------------------------------------
def _controller_kernel(x_ref, r_ref,
                       w0x_ref, w0r_ref, b0_ref,
                       w1_ref, b1_ref,
                       wo_ref, bo_ref,
                       out_ref, *, clip_value):
    w0x = w0x_ref[...]
    cdt = w0x.dtype                      # MXU compute dtype (bf16)
    f32 = jnp.float32

    x = x_ref[...].astype(cdt)
    r = r_ref[...].astype(cdt)

    h = jnp.dot(x, w0x, preferred_element_type=f32)
    h = h + jnp.dot(r, w0r_ref[...], preferred_element_type=f32)
    h = jnp.maximum(h + b0_ref[...], 0.0)                       # f32 VPU

    h = jnp.dot(h.astype(cdt), w1_ref[...], preferred_element_type=f32)
    h = jnp.maximum(h + b1_ref[...], 0.0)

    y = jnp.dot(h.astype(cdt), wo_ref[...], preferred_element_type=f32)
    y = jnp.clip(y + bo_ref[...], -clip_value, clip_value)

    out_ref[...] = y.astype(out_ref.dtype)


# --------------------------------------------------------------------------
# Wrapper: one pallas_call for a whole [T, B, ...] sequence of timesteps.
# Accepts 2-D ([B, D]) single-step inputs as well.
# --------------------------------------------------------------------------
def controller_forward(x, read_vecs, params, *, clip_value):
    """Feed-forward controller.

    x:         [T, B, input_dim]  or [B, input_dim]      float32
    read_vecs: [T, B, read_vec_dim] or [B, read_vec_dim] float32
    params:    dict from init_params (padded, bf16 weights, f32 biases)
    returns:   [T, B, output_dim] (or [B, output_dim])   float32
    """
    squeeze_t = (x.ndim == 2)
    if squeeze_t:
        x = x[None]
        read_vecs = read_vecs[None]

    T, B, Dx = x.shape
    Dr = read_vecs.shape[-1]
    Hp = params["w1"].shape[0]           # padded hidden dim (multiple of 128)
    Op = params["wo"].shape[1]           # padded output dim (multiple of 128)
    out_dim = params["out_dim"]          # logical output dim

    kernel = functools.partial(_controller_kernel, clip_value=float(clip_value))

    # Constant index_maps keep weights/biases VMEM-resident across the T grid
    # (fetched once, no per-step re-DMA); activations are streamed per step.
    w_spec = lambda rows, cols: pl.BlockSpec((rows, cols), lambda t: (0, 0))

    out = pl.pallas_call(
        kernel,
        out_shape=jax.ShapeDtypeStruct((T, B, Op), jnp.float32),
        grid=(T,),
        in_specs=[
            pl.BlockSpec((None, B, Dx), lambda t: (t, 0, 0)),   # x[t]
            pl.BlockSpec((None, B, Dr), lambda t: (t, 0, 0)),   # read_vecs[t]
            w_spec(Dx, Hp),              # W0x
            w_spec(Dr, Hp),              # W0r
            w_spec(1, Hp),               # b0
            w_spec(Hp, Hp),              # W1
            w_spec(1, Hp),               # b1
            w_spec(Hp, Op),              # Wo
            w_spec(1, Op),               # bo
        ],
        out_specs=pl.BlockSpec((None, B, Op), lambda t: (t, 0, 0)),
        compiler_params=pltpu.CompilerParams(
            # timesteps are independent for the feed-forward controller ->
            # "parallel" lets v7x shard the T axis across its 2 TensorCores.
            dimension_semantics=("parallel",)),
    )(x, read_vecs,
      params["w0x"], params["w0r"], params["b0"],
      params["w1"], params["b1"],
      params["wo"], params["bo"])

    out = out[..., :out_dim]             # drop zero-padded output lanes
    if squeeze_t:
        out = out[0]
    return out


# --------------------------------------------------------------------------
# Deterministic parameter init (synthetic; no checkpoint loading).
# Weights are zero-padded ONCE here to 128-lane multiples and cast to bf16;
# biases stay f32 (elementwise path stays f32 inside the kernel).
# --------------------------------------------------------------------------
def init_params(key, input_dim, read_vec_dim, hidden_dim, output_dim,
                *, param_dtype=jnp.bfloat16, lane=128):
    Hp = _round_up(hidden_dim, lane)
    Op = _round_up(output_dim, lane)

    k0x, k0r, k1, k2, kb0, kb1, kbo = jax.random.split(key, 7)

    def dense(k, fan_in, shape):
        return jax.random.normal(k, shape, jnp.float32) * (1.0 / float(fan_in) ** 0.5)

    fan0 = input_dim + read_vec_dim      # logical fan-in of the (split) concat layer
    w0x = dense(k0x, fan0, (input_dim, hidden_dim))
    w0r = dense(k0r, fan0, (read_vec_dim, hidden_dim))
    w1 = dense(k1, hidden_dim, (hidden_dim, hidden_dim))
    wo = dense(k2, hidden_dim, (hidden_dim, output_dim))

    b0 = jax.random.normal(kb0, (1, hidden_dim), jnp.float32) * 0.1
    b1 = jax.random.normal(kb1, (1, hidden_dim), jnp.float32) * 0.1
    bo = jax.random.normal(kbo, (1, output_dim), jnp.float32) * 0.1

    def pad2(a, rows, cols):
        return jnp.pad(a, ((0, rows - a.shape[0]), (0, cols - a.shape[1])))

    return {
        "w0x": pad2(w0x, input_dim, Hp).astype(param_dtype),
        "w0r": pad2(w0r, read_vec_dim, Hp).astype(param_dtype),
        "b0":  pad2(b0, 1, Hp),                       # zero-padded -> relu(0)=0
        "w1":  pad2(w1, Hp, Hp).astype(param_dtype),
        "b1":  pad2(b1, 1, Hp),
        "wo":  pad2(wo, Hp, Op).astype(param_dtype),
        "bo":  pad2(bo, 1, Op),
        "out_dim": int(output_dim),
    }


# --------------------------------------------------------------------------
# Pure-JAX reference (same bf16-operand / f32-accumulate math as the kernel).
# --------------------------------------------------------------------------
def controller_ref(x, read_vecs, params, *, clip_value):
    cdt = params["w0x"].dtype
    f32 = jnp.float32
    h = (jnp.dot(x.astype(cdt), params["w0x"], preferred_element_type=f32)
         + jnp.dot(read_vecs.astype(cdt), params["w0r"], preferred_element_type=f32))
    h = jnp.maximum(h + params["b0"], 0.0)
    h = jnp.dot(h.astype(cdt), params["w1"], preferred_element_type=f32)
    h = jnp.maximum(h + params["b1"], 0.0)
    y = jnp.dot(h.astype(cdt), params["wo"], preferred_element_type=f32) + params["bo"]
    y = jnp.clip(y, -clip_value, clip_value)
    return y[..., :params["out_dim"]]


if __name__ == "__main__":
    # Small config consistent with the module's __init__ hyper-parameters.
    T = 12                       # DNC timesteps batched through the kernel grid
    batch_size = 8
    controller_input_dim = 16
    controller_output_dim = 16
    hidden_dim = 32
    num_hid_layers = 2           # matches the two hidden layers in the kernel
    num_address = 32             # (memory size — not used by the controller MLP)
    mem_cell_dim = 8
    read_heads = 2
    write_heads = 1
    clip_value = 20.0
    read_vec_dim = mem_cell_dim * read_heads   # 16

    key = jax.random.PRNGKey(0)
    kx, kr, kp = jax.random.split(key, 3)

    x = jax.random.normal(kx, (T, batch_size, controller_input_dim), jnp.float32)
    read_vecs = jax.random.normal(kr, (T, batch_size, read_vec_dim), jnp.float32)

    params = init_params(kp, controller_input_dim, read_vec_dim,
                         hidden_dim, controller_output_dim,
                         param_dtype=jnp.bfloat16)

    # full-sequence path (grid over T, weights VMEM-resident)
    out = controller_forward(x, read_vecs, params, clip_value=clip_value)
    out = jax.block_until_ready(out)
    ref = controller_ref(x, read_vecs, params, clip_value=clip_value)
    assert out.shape == (T, batch_size, controller_output_dim)
    assert jnp.allclose(out, ref, atol=1e-3, rtol=1e-3), "sequence mismatch vs reference"

    # single-timestep path (as used inside an external DNC recurrence loop)
    out1 = controller_forward(x[0], read_vecs[0], params, clip_value=clip_value)
    out1 = jax.block_until_ready(out1)
    assert out1.shape == (batch_size, controller_output_dim)
    assert jnp.allclose(out1, ref[0], atol=1e-3, rtol=1e-3), "single-step mismatch vs reference"

    print("KERNEL_OK")
</pallas_src>

<mosaic_0001>
module attributes {stable_mosaic.version = 11 : i64} {
  func.func @_controller_kernel(%arg0: i32, %arg1: memref<1x8x16xf32, #tpu.memory_space<vmem>>, %arg2: memref<1x8x16xf32, #tpu.memory_space<vmem>>, %arg3: memref<16x128xbf16, #tpu.memory_space<vmem>>, %arg4: memref<16x128xbf16, #tpu.memory_space<vmem>>, %arg5: memref<1x128xf32, #tpu.memory_space<vmem>>, %arg6: memref<128x128xbf16, #tpu.memory_space<vmem>>, %arg7: memref<1x128xf32, #tpu.memory_space<vmem>>, %arg8: memref<128x128xbf16, #tpu.memory_space<vmem>>, %arg9: memref<1x128xf32, #tpu.memory_space<vmem>>, %arg10: memref<1x8x128xf32, #tpu.memory_space<vmem>>) attributes {dimension_semantics = [#tpu.dimension_semantics<parallel>], iteration_bounds = array<i64: 12>, scalar_prefetch = 0 : i64, scratch_operands = 0 : i64, tpu.core_type = #tpu.core_type<tc>, window_params = [{transform_indices = @transform_0, window_bounds = array<i64: 1, 8, 16>}, {transform_indices = @transform_1, window_bounds = array<i64: 1, 8, 16>}, {pipeline_mode = #tpu.pipeline_mode<synchronous>, transform_indices = @transform_2, window_bounds = array<i64: 16, 128>}, {pipeline_mode = #tpu.pipeline_mode<synchronous>, transform_indices = @transform_3, window_bounds = array<i64: 16, 128>}, {pipeline_mode = #tpu.pipeline_mode<synchronous>, transform_indices = @transform_4, window_bounds = array<i64: 1, 128>}, {pipeline_mode = #tpu.pipeline_mode<synchronous>, transform_indices = @transform_5, window_bounds = array<i64: 128, 128>}, {pipeline_mode = #tpu.pipeline_mode<synchronous>, transform_indices = @transform_6, window_bounds = array<i64: 1, 128>}, {pipeline_mode = #tpu.pipeline_mode<synchronous>, transform_indices = @transform_7, window_bounds = array<i64: 128, 128>}, {pipeline_mode = #tpu.pipeline_mode<synchronous>, transform_indices = @transform_8, window_bounds = array<i64: 1, 128>}, {transform_indices = @transform_9, window_bounds = array<i64: 1, 8, 128>}]} {
    %c0 = arith.constant 0 : index
    %c0_0 = arith.constant 0 : index
    %0 = vector.load %arg3[%c0, %c0_0] : memref<16x128xbf16, #tpu.memory_space<vmem>>, vector<16x128xbf16>
    %c0_1 = arith.constant 0 : index
    %c0_2 = arith.constant 0 : index
    %c0_3 = arith.constant 0 : index
    %1 = vector.load %arg1[%c0_1, %c0_2, %c0_3] : memref<1x8x16xf32, #tpu.memory_space<vmem>>, vector<1x8x16xf32>
    %2 = vector.shape_cast %1 : vector<1x8x16xf32> to vector<8x16xf32>
    %3 = arith.truncf %2 : vector<8x16xf32> to vector<8x16xbf16>
    %c0_4 = arith.constant 0 : index
    %c0_5 = arith.constant 0 : index
    %c0_6 = arith.constant 0 : index
    %4 = vector.load %arg2[%c0_4, %c0_5, %c0_6] : memref<1x8x16xf32, #tpu.memory_space<vmem>>, vector<1x8x16xf32>
    %5 = vector.shape_cast %4 : vector<1x8x16xf32> to vector<8x16xf32>
    %6 = arith.truncf %5 : vector<8x16xf32> to vector<8x16xbf16>
    %cst = arith.constant dense<0.000000e+00> : vector<8x128xf32>
    %7 = tpu.matmul %3, %0, %cst {dimension_numbers = #tpu.dot_dimension_numbers<[1], [0], [0], [1], [0, 0, 1, 1], [], []>} : vector<8x16xbf16>, vector<16x128xbf16>, vector<8x128xf32> -> vector<8x128xf32>
    %c0_7 = arith.constant 0 : index
    %c0_8 = arith.constant 0 : index
    %8 = vector.load %arg4[%c0_7, %c0_8] : memref<16x128xbf16, #tpu.memory_space<vmem>>, vector<16x128xbf16>
    %cst_9 = arith.constant dense<0.000000e+00> : vector<8x128xf32>
    %9 = tpu.matmul %6, %8, %cst_9 {dimension_numbers = #tpu.dot_dimension_numbers<[1], [0], [0], [1], [0, 0, 1, 1], [], []>} : vector<8x16xbf16>, vector<16x128xbf16>, vector<8x128xf32> -> vector<8x128xf32>
    %10 = arith.addf %7, %9 : vector<8x128xf32>
    %c0_10 = arith.constant 0 : index
    %c0_11 = arith.constant 0 : index
    %11 = vector.load %arg5[%c0_10, %c0_11] : memref<1x128xf32, #tpu.memory_space<vmem>>, vector<1x128xf32>
    %12 = vector.broadcast %11 : vector<1x128xf32> to vector<8x128xf32>
    %13 = arith.addf %10, %12 : vector<8x128xf32>
    %cst_12 = arith.constant 0.000000e+00 : f32
    %14 = vector.broadcast %cst_12 : f32 to vector<8x128xf32>
    %15 = arith.maximumf %13, %14 : vector<8x128xf32>
    %16 = arith.truncf %15 : vector<8x128xf32> to vector<8x128xbf16>
    %c0_13 = arith.constant 0 : index
    %c0_14 = arith.constant 0 : index
    %17 = vector.load %arg6[%c0_13, %c0_14] : memref<128x128xbf16, #tpu.memory_space<vmem>>, vector<128x128xbf16>
    %cst_15 = arith.constant dense<0.000000e+00> : vector<8x128xf32>
    %18 = tpu.matmul %16, %17, %cst_15 {dimension_numbers = #tpu.dot_dimension_numbers<[1], [0], [0], [1], [0, 0, 1, 1], [], []>} : vector<8x128xbf16>, vector<128x128xbf16>, vector<8x128xf32> -> vector<8x128xf32>
    %c0_16 = arith.constant 0 : index
    %c0_17 = arith.constant 0 : index
    %19 = vector.load %arg7[%c0_16, %c0_17] : memref<1x128xf32, #tpu.memory_space<vmem>>, vector<1x128xf32>
    %20 = vector.broadcast %19 : vector<1x128xf32> to vector<8x128xf32>
    %21 = arith.addf %18, %20 : vector<8x128xf32>
    %cst_18 = arith.constant 0.000000e+00 : f32
    %22 = vector.broadcast %cst_18 : f32 to vector<8x128xf32>
    %23 = arith.maximumf %21, %22 : vector<8x128xf32>
    %24 = arith.truncf %23 : vector<8x128xf32> to vector<8x128xbf16>
    %c0_19 = arith.constant 0 : index
    %c0_20 = arith.constant 0 : index
    %25 = vector.load %arg8[%c0_19, %c0_20] : memref<128x128xbf16, #tpu.memory_space<vmem>>, vector<128x128xbf16>
    %cst_21 = arith.constant dense<0.000000e+00> : vector<8x128xf32>
    %26 = tpu.matmul %24, %25, %cst_21 {dimension_numbers = #tpu.dot_dimension_numbers<[1], [0], [0], [1], [0, 0, 1, 1], [], []>} : vector<8x128xbf16>, vector<128x128xbf16>, vector<8x128xf32> -> vector<8x128xf32>
    %c0_22 = arith.constant 0 : index
    %c0_23 = arith.constant 0 : index
    %27 = vector.load %arg9[%c0_22, %c0_23] : memref<1x128xf32, #tpu.memory_space<vmem>>, vector<1x128xf32>
    %28 = vector.broadcast %27 : vector<1x128xf32> to vector<8x128xf32>
    %29 = arith.addf %26, %28 : vector<8x128xf32>
    %cst_24 = arith.constant -2.000000e+01 : f32
    %cst_25 = arith.constant 2.000000e+01 : f32
    %30 = vector.broadcast %cst_24 : f32 to vector<8x128xf32>
    %31 = arith.maximumf %30, %29 : vector<8x128xf32>
    %32 = vector.broadcast %cst_25 : f32 to vector<8x128xf32>
    %33 = arith.minimumf %32, %31 : vector<8x128xf32>
    %c0_26 = arith.constant 0 : index
    %c0_27 = arith.constant 0 : index
    %c0_28 = arith.constant 0 : index
    %34 = vector.load %arg10[%c0_26, %c0_27, %c0_28] : memref<1x8x128xf32, #tpu.memory_space<vmem>>, vector<1x8x128xf32>
    %35 = vector.shape_cast %34 : vector<1x8x128xf32> to vector<8x128xf32>
    %36 = vector.shape_cast %33 : vector<8x128xf32> to vector<1x8x128xf32>
    tpu.vector_store %arg10[%c0_26, %c0_27, %c0_28], %36 {strides = array<i32>} : memref<1x8x128xf32, #tpu.memory_space<vmem>>, vector<1x8x128xf32>,
    return
  }
  func.func @transform_0(%arg0: i32) -> (i32, i32, i32) {
    %c0_i32 = arith.constant 0 : i32
    %c0_i32_0 = arith.constant 0 : i32
    %c0_i32_1 = arith.constant 0 : i32
    return %arg0, %c0_i32, %c0_i32_0 : i32, i32, i32
  }
  func.func @transform_1(%arg0: i32) -> (i32, i32, i32) {
    %c0_i32 = arith.constant 0 : i32
    %c0_i32_0 = arith.constant 0 : i32
    %c0_i32_1 = arith.constant 0 : i32
    return %arg0, %c0_i32, %c0_i32_0 : i32, i32, i32
  }
  func.func @transform_2(%arg0: i32) -> (i32, i32) {
    %c0_i32 = arith.constant 0 : i32
    %c0_i32_0 = arith.constant 0 : i32
    %c0_i32_1 = arith.constant 0 : i32
    return %c0_i32, %c0_i32_0 : i32, i32
  }
  func.func @transform_3(%arg0: i32) -> (i32, i32) {
    %c0_i32 = arith.constant 0 : i32
    %c0_i32_0 = arith.constant 0 : i32
    %c0_i32_1 = arith.constant 0 : i32
    return %c0_i32, %c0_i32_0 : i32, i32
  }
  func.func @transform_4(%arg0: i32) -> (i32, i32) {
    %c0_i32 = arith.constant 0 : i32
    %c0_i32_0 = arith.constant 0 : i32
    %c0_i32_1 = arith.constant 0 : i32
    return %c0_i32, %c0_i32_0 : i32, i32
  }
  func.func @transform_5(%arg0: i32) -> (i32, i32) {
    %c0_i32 = arith.constant 0 : i32
    %c0_i32_0 = arith.constant 0 : i32
    %c0_i32_1 = arith.constant 0 : i32
    return %c0_i32, %c0_i32_0 : i32, i32
  }
  func.func @transform_6(%arg0: i32) -> (i32, i32) {
    %c0_i32 = arith.constant 0 : i32
    %c0_i32_0 = arith.constant 0 : i32
    %c0_i32_1 = arith.constant 0 : i32
    return %c0_i32, %c0_i32_0 : i32, i32
  }
  func.func @transform_7(%arg0: i32) -> (i32, i32) {
    %c0_i32 = arith.constant 0 : i32
    %c0_i32_0 = arith.constant 0 : i32
    %c0_i32_1 = arith.constant 0 : i32
    return %c0_i32, %c0_i32_0 : i32, i32
  }
  func.func @transform_8(%arg0: i32) -> (i32, i32) {
    %c0_i32 = arith.constant 0 : i32
    %c0_i32_0 = arith.constant 0 : i32
    %c0_i32_1 = arith.constant 0 : i32
    return %c0_i32, %c0_i32_0 : i32, i32
  }
  func.func @transform_9(%arg0: i32) -> (i32, i32, i32) {
    %c0_i32 = arith.constant 0 : i32
    %c0_i32_0 = arith.constant 0 : i32
    %c0_i32_1 = arith.constant 0 : i32
    return %arg0, %c0_i32, %c0_i32_0 : i32, i32, i32
  }
}

</mosaic_0001>

<bundles_post_ra>
// kernel: tpu_custom_call.1
= control target key start
LH: loop header
LB: loop body
LE: loop exit
PB: predicated region body
PF: predicated region fallthrough
CT: control target
= control target key end

     0   :  { %s1753_s0 = inlined_call_operand.hbm [shape: f32[12,8,16], index: 0, kind: input, shape index: {}]   ;;  %s1754_s1 = inlined_call_operand.hbm [shape: f32[12,8,16], index: 1, kind: input, shape index: {}]   ;;  %s1755_s2 = inlined_call_operand.hbm [shape: bf16[16,128], index: 2, kind: input, shape index: {}]   ;;  %s1756_s3 = inlined_call_operand.vmem [shape: bf16[16,128], index: 3, kind: input, shape index: {}]   ;;  %s1757_s4 = inlined_call_operand.vmem [shape: f32[1,128], index: 4, kind: input, shape index: {}]   ;;  %s1758_s5 = inlined_call_operand.hbm [shape: bf16[128,128], index: 5, kind: input, shape index: {}]   ;;  %s1759_s6 = inlined_call_operand.vmem [shape: f32[1,128], index: 6, kind: input, shape index: {}]   ;;  %s1760_s7 = inlined_call_operand.hbm [shape: bf16[128,128], index: 7, kind: input, shape index: {}]   ;;  %s1761_s8 = inlined_call_operand.vmem [shape: f32[1,128], index: 8, kind: input, shape index: {}]   ;;  %s1762_s9 = inlined_call_operand.hbm [shape: f32[12,8,128], index: 9, kind: output, shape index: {}]  }
   0x1   :  { %1770 = sst [smem:[#allocation19_spill]] %s1755_s2 }
   0x2   :  { %1771 = sst [smem:[#allocation20_spill]] %s1758_s5 }
   0x3   :  { %1772 = sst [smem:[#allocation21_spill]] %s1760_s7 }
   0x4   :  { %1773 = sst [smem:[#allocation22_spill]] %s1762_s9 }
   0x5   :  { %14 = vsyncpa [#allocation3], 0 }
   0x6   :  { %16 = vsyncpa [#allocation3 + $0x1], 0 }
   0x7   :  { %17 = vsyncpa [#allocation6], 0 }
   0x8   :  { %19 = vsyncpa [#allocation6 + $0x1], 0 }
   0x9   :  { %20 = vsyncpa [#allocation9], 0 }
   0xa   :  { %21 = vsyncpa [#allocation4], 0 }
   0xb   :  { %23 = vsyncpa [#allocation4 + $0x1], 0  ;;  %s1415_s30 = smov 0   ;;  %s1417_s10 = smov 0  }
   0xc   :  { %s1419_s11 = smov 0   ;;  %s1421_s12 = smov 0  }
   0xd LB: > { %1774 = sst [smem:[#allocation17_spill]] %s1341_s30  ;;  %s1436_s13 = sadd.s32 4294967295, %s1353_s12   ;;  %s1353_s12 = sphi %s1421_s12, %s1801_s12   ;;  %s1349_s11 = sphi %s1419_s11, %s1800_s11   ;;  %s1345_s10 = sphi %s1417_s10, %s1799_s10   ;;  %s1341_s30 = sphi %s1415_s30, %s1798_s30  }
   0xe   : > { %s908_s14 = sadd.s32 4294967294, %s1353_s12   ;;  %p49_p0 = scmp.ne.s32.totalorder %s1345_s10, %s1341_s30 }
   0xf   : > { %p1763_p1 = scmp.eq.s32.totalorder %s1436_s13, 0  ;;  %p252_p3 = scmp.eq.s32.totalorder %s908_s14, 11 }
  0x10   : > { %p909_p5 = scmp.ge.s32.totalorder %s1353_s12, 1  ;;  %p259_p7 = scmp.lt.s32.totalorder %s1353_s12, 13 }
  0x11   : > { %p1445_p4 = por %p1763_p1, %p49_p0  ;;  %p1450_p6 = por %p252_p3, %p49_p0 }
  0x12   : > { %p1455_p8 = pnand %p909_p5, %p259_p7  ;;  %s1355_s18 = smov [#allocation7]  }
  0x13   : > { %s1775_s15 = scalar_select %p1445_p4, 1, 0 }
  0x14   : > { %s1776_s16 = scalar_select %p1450_p6, 1, 0 }
  0x15   : > { %s1778_s17 = scalar_select %p1455_p8, 1, 0 }
  0x16   : > { %1777 = sst [smem:[#allocation18_spill]] %s1776_s16  ;;  %s271_s19 = sshll.u32 %s1355_s18, 4  ;;  %s1459_s19 = int_to_ptr.vmem [resolvable:$true] %s271_s19 }
  0x17   : > { %p1045_p9 = pneg %p1455_p8  ;;  %s1356_s21 = smov [#allocation8]  }
  0x18   : > { %s290_s22 = sshll.u32 %s1356_s21, 4  ;;  %s1357_s23 = smov [#allocation10]   ;;  %s1469_s22 = int_to_ptr.vmem [resolvable:$true] %s290_s22 }
  0x19   : > { %p1465_p10 = pnand %p1045_p9, %p1763_p1  ;;  %s1471_s24 = sshll.u32 %s1357_s23, 4  ;;  %s307_s24 = int_to_ptr.vmem [resolvable:$true] %s1471_s24 }
  0x1a   : > { %s1780_s2 = sld [smem:[#allocation19_spill]] }
  0x1b   : > { %p1481_p12 = pneg %p1465_p10 }
  0x20   : > { %s1131_s27 = scalar_lea.hbm %s1780_s2, 128 }
  0x21   : > { %p1132_p11 = scmp.ne.s32.totalorder %s1780_s2, %s1131_s27  ;;  %p1138_p3 = scmp.lt.u32.totalorder %s1131_s27, %s1780_s2 }
  0x23   : > { %p1134_p13 = pnand %p1481_p12, %p1132_p11 }
  0x25   : > { %p1135_p0 = pneg %p1134_p13 }
  0x27   : > { %p1140_p5 = pnand %p1138_p3, %p1135_p0 }
  0x29   : > { %1143 = shalt.err (!%p1140_p5)
}
  0x2a   : > { %s1144_s23 = scalar_lea.vmem %s1459_s19, 128  ;;  %p1152_p2 = scmp.lt.s32.totalorder %s1459_s19, %s1459_s19 }
  0x2b   : > { %p1145_p7 = scmp.ne.s32.totalorder %s1459_s19, %s1144_s23  ;;  %p1153_p6 = scmp.lt.s32.totalorder %s1144_s23, %s1144_s23 }
  0x2d   : > { %p1147_p9 = pnand %p1145_p7, %p1481_p12  ;;  %p1154_p11 = por %p1153_p6, %p1152_p2 }
  0x2f   : > { %p1148_p1 = pneg %p1147_p9 }
  0x31   : > { %p1155_p13 = pnand %p1154_p11, %p1148_p1 }
  0x33   : > { %1158 = shalt.err (!%p1155_p13)
}
  0x34   : > { %s1358_s25 = smov 64   ;;  %s1359_s26 = smov 4  }
  0x35   : > { %1048 = dma.hbm_to_vmem [thread:$0]  (!%p1465_p10), %s1780_s2, 128, %s1459_s19, [#allocation6], %s1358_s25, %s1358_s25, %s1359_s26  }
  0x36   : > { %s1782_s5 = sld [smem:[#allocation20_spill]] }
  0x3c   : > { %s1159_s21 = scalar_lea.hbm %s1782_s5, 1024 }
  0x3d   : > { %p1160_p1 = scmp.ne.s32.totalorder %s1782_s5, %s1159_s21  ;;  %p1166_p0 = scmp.lt.u32.totalorder %s1159_s21, %s1782_s5 }
  0x3f   : > { %p1162_p2 = pnand %p1160_p1, %p1481_p12 }
  0x41   : > { %p1163_p6 = pneg %p1162_p2 }
  0x43   : > { %p1168_p3 = pnand %p1166_p0, %p1163_p6 }
  0x45   : > { %1171 = shalt.err (!%p1168_p3)
}
  0x46   : > { %s1172_s19 = scalar_lea.vmem %s1469_s22, 1024  ;;  %p1180_p11 = scmp.lt.s32.totalorder %s1469_s22, %s1469_s22 }
  0x47   : > { %p1173_p5 = scmp.ne.s32.totalorder %s1469_s22, %s1172_s19  ;;  %p1181_p13 = scmp.lt.s32.totalorder %s1172_s19, %s1172_s19 }
  0x49   : > { %p1175_p7 = pnand %p1173_p5, %p1481_p12  ;;  %p1182_p1 = por %p1181_p13, %p1180_p11 }
  0x4b   : > { %p1176_p9 = pneg %p1175_p7 }
  0x4d   : > { %p1183_p2 = pnand %p1182_p1, %p1176_p9 }
  0x4f   : > { %1186 = shalt.err (!%p1183_p2)
}
  0x50   : > { %1051 = dma.hbm_to_vmem [thread:$0]  (!%p1465_p10), %s1782_s5, 1024, %s1469_s22, [#allocation9], %s1358_s25, %s1358_s25, %s1359_s26  }
  0x51   : > { %s1783_s7 = sld [smem:[#allocation21_spill]] }
  0x57   : > { %s1187_s28 = scalar_lea.hbm %s1783_s7, 1024 }
  0x58   : > { %p1188_p6 = scmp.ne.s32.totalorder %s1783_s7, %s1187_s28  ;;  %p1194_p5 = scmp.lt.u32.totalorder %s1187_s28, %s1783_s7 }
  0x5a   : > { %p1190_p0 = pnand %p1188_p6, %p1481_p12 }
  0x5c   : > { %p1191_p3 = pneg %p1190_p0 }
  0x5e   : > { %p1196_p7 = pnand %p1194_p5, %p1191_p3 }
  0x60   : > { %1199 = shalt.err (!%p1196_p7)
}
  0x61   : > { %s1200_s19 = scalar_lea.vmem %s307_s24, 1024  ;;  %p1208_p1 = scmp.lt.s32.totalorder %s307_s24, %s307_s24 }
  0x62   : > { %p1201_p9 = scmp.ne.s32.totalorder %s307_s24, %s1200_s19  ;;  %p1209_p2 = scmp.lt.s32.totalorder %s1200_s19, %s1200_s19 }
  0x64   : > { %p1203_p11 = pnand %p1201_p9, %p1481_p12  ;;  %p1210_p4 = por %p1209_p2, %p1208_p1 }
  0x66   : > { %p1204_p13 = pneg %p1203_p11 }
  0x68   : > { %p1211_p8 = pnand %p1210_p4, %p1204_p13 }
  0x6a   : > { %1214 = shalt.err (!%p1211_p8)
}
  0x6b   : > { %1054 = dma.hbm_to_vmem [thread:$0]  (!%p1465_p10), %s1783_s7, 1024, %s307_s24, [#allocation9], %s1358_s25, %s1358_s25, %s1359_s26  }
  0x6c   : > { %s1554_s14 = sadd.s32 1, %s1353_s12   ;;  %s36_s30 = sadd.s32 1, %s1349_s11 }
  0x6d   : > { %s33_s20 = ssub.s32 %s1353_s12, %s1554_s14  ;;  %p43_p8 = scmp.ne.s32.totalorder %s1349_s11, %s1345_s10 }
  0x6e   : > { %p34_p4 = scmp.eq.s32.totalorder %s33_s20, 0  ;;  %p44_p12 = scmp.eq.s32.totalorder %s1353_s12, 0 }
  0x6f   : > { %p1069_p6 = scmp.lt.s32.totalorder %s1353_s12, 12  ;;  %p1784_p3 = scmp.eq.s32.totalorder %s1436_s13, 11 }
  0x70   : > { %s1564_s16 = scalar_select %p34_p4, %s1349_s11, %s36_s30  }
  0x71   : > { %p45_p0 = por %p44_p12, %p43_p8  ;;  %p1568_p5 = por %p1784_p3, %p43_p8 }
  0x72   : > { %s323_s28 = sand.u32 1, %s1349_s11   ;;  %s915_s29 = sshll.u32 %s1353_s12, 7 }
  0x73   : > { %s1785_s27 = scalar_select %p1568_p5, 1, 0 }
  0x74   : > { %s1574_s24 = sshll.u32 %s323_s28, 3  ;;  %s1579_s18 = scalar_lea.hbm %s1753_s0, %s915_s29 }
  0x75   : > { %s327_s21 = scalar_lea.vmem [#allocation2], %s1574_s24  ;;  %p1582_p10 = pnand %p1069_p6, %p45_p0 }
  0x76   : > { %s334_s23 = sshll.u32 %s327_s21, 4  ;;  %s1591_s20 = scalar_lea.hbm %s1754_s1, %s915_s29  ;;  %s1586_s23 = int_to_ptr.vmem [resolvable:$true] %s334_s23 }
  0x77   : > { %s324_s30 = scalar_lea.sflag [#allocation3], %s323_s28  ;;  %s1215_s25 = scalar_lea.hbm %s1579_s18, 128 }
  0x78   : > { %p1216_p7 = scmp.ne.s32.totalorder %s1579_s18, %s1215_s25  ;;  %p1217_p9 = pneg %p1582_p10 }
  0x79   : > { %s1220_s2 = scalar_lea.hbm %s1753_s0, 1536  ;;  %p1221_p1 = scmp.lt.u32.totalorder %s1579_s18, %s1753_s0 }
  0x7a   : > { %p1218_p11 = pnand %p1217_p9, %p1216_p7  ;;  %p1222_p2 = scmp.lt.u32.totalorder %s1220_s2, %s1215_s25 }
  0x7b   : > { %p1224_p8 = scmp.lt.u32.totalorder %s1215_s25, %s1579_s18 }
  0x7c   : > { %p1219_p13 = pneg %p1218_p11  ;;  %p1223_p4 = por %p1222_p2, %p1221_p1 }
  0x7e   : > { %p1225_p12 = por %p1224_p8, %p1223_p4 }
  0x80   : > { %p1226_p6 = pnand %p1225_p12, %p1219_p13 }
  0x82   : > { %1229 = shalt.err (!%p1226_p6)
}
  0x83   : > { %s1230_s28 = scalar_lea.vmem %s1586_s23, 128  ;;  %s1360_s29 = smov [#allocation2]  }
  0x84   : > { %p1231_p0 = scmp.ne.s32.totalorder %s1586_s23, %s1230_s28  ;;  %s1235_s22 = sshll.u32 %s1360_s29, 4  ;;  %s1236_s22 = int_to_ptr.vmem [resolvable:$false] %s1235_s22 }
  0x85   : > { %s1237_s5 = scalar_lea.vmem %s1236_s22, 256  ;;  %p1238_p11 = scmp.lt.s32.totalorder %s1586_s23, %s1236_s22 }
  0x86   : > { %p1233_p3 = pnand %p1231_p0, %p1217_p9  ;;  %p1239_p1 = scmp.lt.s32.totalorder %s1237_s5, %s1230_s28 }
  0x88   : > { %p1234_p7 = pneg %p1233_p3  ;;  %p1240_p2 = por %p1239_p1, %p1238_p11 }
  0x8a   : > { %p1241_p4 = pnand %p1240_p2, %p1234_p7 }
  0x8c   : > { %1244 = shalt.err (!%p1241_p4)
}
  0x8d   : > { %1058 = dma.hbm_to_vmem [thread:$0]  (!%p1582_p10), %s1579_s18, 128, %s1586_s23, %s324_s30  }
  0x8e   : > { %s341_s2 = sand.u32 1, %s1353_s12   ;;  %s345_s7 = scalar_lea.vmem [#allocation5], %s1574_s24 }
  0x8f   : > { %s352_s9 = sshll.u32 %s345_s7, 4  ;;  %s342_s25 = scalar_lea.sflag [#allocation6], %s341_s2  ;;  %s353_s9 = int_to_ptr.vmem [resolvable:$true] %s352_s9 }
  0x90   : > { %s1245_s26 = scalar_lea.hbm %s1591_s20, 128  ;;  %s1250_s29 = scalar_lea.hbm %s1754_s1, 1536 }
  0x91   : > { %p1246_p13 = scmp.ne.s32.totalorder %s1591_s20, %s1245_s26  ;;  %p1251_p6 = scmp.lt.u32.totalorder %s1591_s20, %s1754_s1 }
  0x92   : > { %p1252_p0 = scmp.lt.u32.totalorder %s1250_s29, %s1245_s26  ;;  %p1254_p7 = scmp.lt.u32.totalorder %s1245_s26, %s1591_s20 }
  0x93   : > { %p1248_p8 = pnand %p1246_p13, %p1217_p9 }
  0x94   : > { %p1253_p3 = por %p1252_p0, %p1251_p6 }
  0x95   : > { %p1249_p12 = pneg %p1248_p8 }
  0x96   : > { %p1255_p11 = por %p1254_p7, %p1253_p3 }
  0x98   : > { %p1256_p1 = pnand %p1255_p11, %p1249_p12 }
  0x9a   : > { %1259 = shalt.err (!%p1256_p1)
}
  0x9b   : > { %s1260_s24 = scalar_lea.vmem %s353_s9, 128  ;;  %s1361_s18 = smov [#allocation5]  }
  0x9c   : > { %p1261_p2 = scmp.ne.s32.totalorder %s353_s9, %s1260_s24  ;;  %s1265_s23 = sshll.u32 %s1361_s18, 4  ;;  %s1266_s23 = int_to_ptr.vmem [resolvable:$false] %s1265_s23 }
  0x9d   : > { %s1267_s30 = scalar_lea.vmem %s1266_s23, 256  ;;  %p1268_p8 = scmp.lt.s32.totalorder %s353_s9, %s1266_s23 }
  0x9e   : > { %p1263_p4 = pnand %p1261_p2, %p1217_p9  ;;  %p1269_p5 = scmp.lt.s32.totalorder %s1267_s30, %s1260_s24 }
  0xa0   : > { %p1264_p13 = pneg %p1263_p4  ;;  %p1270_p0 = por %p1269_p5, %p1268_p8 }
  0xa2   : > { %p1271_p6 = pnand %p1270_p0, %p1264_p13 }
  0xa4   : > { %1274 = shalt.err (!%p1271_p6)
}
  0xa5   : > { %1061 = dma.hbm_to_vmem [thread:$0]  (!%p1582_p10), %s1591_s20, 128, %s353_s9, %s342_s25  }
  0xa6   : > { %p1787_p12 = scmp.ne.s32.totalorder %s1778_s17, 0 }
  0xa7   : > { %s1642_s2 = sand.u32 (!%p1787_p12), 1, %s1345_s10   ;;  %p1788_p5 = scmp.ne.s32.totalorder (!%p1787_p12), %s1775_s15, 0 }
  0xa8   : > { %361 = sbr.rel (%p1787_p12) target bundleno = 860 (0x35c), region = 56  ;;  %s1645_s7 = sshll.u32 (!%p1787_p12), %s1642_s2, 3 }
  0xa9   : > { %s364_s26 = scalar_lea.sflag (!%p1787_p12), [#allocation3], %s1642_s2  ;;  %s367_s21 = scalar_lea.vmem (!%p1787_p12), [#allocation2], %s1645_s7 }
  0xaf   : > { %1320 = dma.done.wait (%p1788_p5), %s364_s26, 128  }
  0xb0   : > { %1322 = vsyncadd (%p1788_p5), %s364_s26, 4294967168  ;;  %s372_s17 = sand.u32 1, %s1436_s13   ;;  %s376_s20 = scalar_lea.vmem [#allocation5], %s1645_s7 }
  0xb1   : > { %s373_s19 = scalar_lea.sflag [#allocation6], %s372_s17 }
  0xb2   : > { %1324 = dma.done.wait (%p1788_p5), %s373_s19, 128  }
  0xb3   : > { %1326 = vsyncadd (%p1788_p5), %s373_s19, 4294967168  ;;  %p1789_p10 = scmp.eq.s32.totalorder %s1436_s13, 0 }
  0xb5   : > { %1328 = dma.done.wait (%p1789_p10), [#allocation6], 128   ;;  %p1790_p9 = pmov %p1789_p10 }
  0xb7   : > { %1330 = vsyncadd (%p1790_p9), [#allocation6], 4294967168  ;;  %p1791_p3 = pmov %p1790_p9 }
  0xb9   : > { %1332 = dma.done.wait (%p1791_p3), [#allocation9], 2048   ;;  %p1792_p7 = pmov %p1791_p3 }
  0xba   : > { %v1362_v0 = vmov 0.0   ;;  %vm1363_vm0 = vmmov 0   ;;  %v1113_v1 = vld [vmem:[%s1756_s3] sm:$0xff]   ;;  %v433_v3 = vld [vmem:[%s376_s20] sm:$0xff]  ;;  %vm443_vm1 = vcmask 130048   ;;  %v1115_v7 = vld [vmem:[#allocation8] sm:$0xff]  }
  0xbb   : > { %1334 = vsyncadd (%p1792_p7), [#allocation9], 4294965248  ;;  %975 = vmatprep.subr.bf16.mxu0 %v1362_v0  ;;  %981 = vmatprep.subr.bf16.mxu1 %v1362_v0  ;;  %v1114_v2 = vld [vmem:[#allocation7] sm:$0xff]   ;;  %v434_v5 = vpack.c.bf16 %v433_v3, %v433_v3  ;;  %v1116_v8 = vld [vmem:[#allocation8 + $0x8] sm:$0xff]   ;;  %s950_s18 = sshll.u32 %s1436_s13, 7  ;;  %s427_s23 = scalar_lea.vmem [#allocation11], %s1645_s7 }
  0xbc   : > { %977 = vmatprep.mubr.msk.bf16.mxu0 %vm1363_vm0, %v1362_v0  ;;  %983 = vmatprep.mubr.msk.bf16.mxu1 %vm1363_vm0, %v1362_v0  ;;  %v431_v4 = vld [vmem:[%s367_s21] sm:$0xff]  ;;  %v1117_v9 = vld [vmem:[#allocation8 + $0x10] sm:$0xff]   ;;  %v1120_v12 = vld [vmem:[#allocation8 + $0x28] sm:$0xff]   ;;  %s787_s30 = sshll.u32 %s427_s23, 4  ;;  %s1793_s17 = sld [smem:[#allocation22_spill]]  ;;  %s1712_s30 = int_to_ptr.vmem [resolvable:$true] %s787_s30 }
  0xbd   : > { %976 = vmatpush3.bf16.msra.mxu0 %v1113_v1  ;;  %982 = vmatpush3.bf16.msra.mxu1 %v1114_v2  ;;  %v432_v6 = vpack.c.bf16 %v431_v4, %v431_v4  ;;  %v1118_v10 = vld [vmem:[#allocation8 + $0x18] sm:$0xff]   ;;  %v1119_v11 = vld [vmem:[#allocation8 + $0x20] sm:$0xff]   ;;  %v1121_v13 = vld [vmem:[#allocation8 + $0x30] sm:$0xff]   ;;  %s774_s20 = scalar_lea.sflag [#allocation4], %s1642_s2  ;;  %s1275_s13 = scalar_lea.vmem %s1712_s30, 128 }
  0xbe   : > { %987 = vmatprep.subr.bf16.mxu0 %v1362_v0  ;;  %1007 = vmatprep.subr.bf16.mxu1 %v1362_v0  ;;  %v1122_v14 = vld [vmem:[#allocation8 + $0x38] sm:$0xff]   ;;  %v1123_v15 = vld [vmem:[#allocation10] sm:$0xff]   ;;  %v1124_v16 = vld [vmem:[#allocation10 + $0x8] sm:$0xff]   ;;  %p1276_p11 = scmp.ne.s32.totalorder %s1712_s30, %s1275_s13  ;;  %p1794_p1 = scmp.ne.s32.totalorder %s1785_s27, 0 }
  0xbf   : > { %v1125_v17 = vld [vmem:[#allocation10 + $0x10] sm:$0xff]   ;;  %v1126_v18 = vld [vmem:[#allocation10 + $0x18] sm:$0xff]   ;;  %v1127_v19 = vld [vmem:[#allocation10 + $0x20] sm:$0xff]   ;;  %s1364_s7 = smov [#allocation11]  }
  0xc0   : > { %978 = vmatmul.mubr.msk.bf16.vlgmr.msra.gmra.mrb[0].mxu0 %vm443_vm1, %v434_v5  ;;  %984 = vmatmul.mubr.msk.bf16.vlgmr.msra.gmra.mrb[0].mxu1 %vm443_vm1, %v432_v6  ;;  %v1128_v20 = vld [vmem:[#allocation10 + $0x28] sm:$0xff]   ;;  %v929_v23 = vld [vmem:[%s1757_s4] ss:$0 sm:$0xff]  ;;  %v1129_v34 = vld [vmem:[#allocation10 + $0x30] sm:$0xff]   ;;  %p1277_p2 = pnand %p1276_p11, %p1794_p1  ;;  %s1279_s15 = sshll.u32 %s1364_s7, 4  ;;  %s1280_s15 = int_to_ptr.vmem [resolvable:$false] %s1279_s15 }
  0xc1   : > { %988 = vmatpush3.bf16.msra.mxu0 %v1115_v7  ;;  %1003 = vmatprep.mubr.msk.bf16.mxu0 %vm1363_vm0, %v1362_v0  ;;  %v1130_v35 = vld [vmem:[#allocation10 + $0x38] sm:$0xff]   ;;  %s1281_s9 = scalar_lea.vmem %s1280_s15, 256  ;;  %p1282_p13 = scmp.lt.s32.totalorder %s1712_s30, %s1280_s15 }
  0xc2   : > { %989 = vmatprep.subr.bf16.mxu0 %v1362_v0  ;;  %1023 = vmatprep.mubr.msk.bf16.mxu1 %vm1363_vm0, %v1362_v0  ;;  %v930_v36 = vld [vmem:[%s1759_s6] ss:$0 sm:$0xff]  ;;  %s1710_s19 = scalar_lea.hbm %s1793_s17, %s950_s18  ;;  %p1278_p4 = pneg %p1277_p2 }
  0xc3   : > { %1008 = vmatpush3.bf16.msra.mxu1 %v1123_v15  ;;  %v939_v44 = vld [vmem:[%s1761_s8] ss:$0 sm:$0xff]  ;;  %p1283_p8 = scmp.lt.s32.totalorder %s1281_s9, %s1275_s13 }
  0xc4   : > { %1009 = vmatprep.subr.bf16.mxu1 %v1362_v0 }
  0xc5   : > { %990 = vmatpush3.bf16.msra.mxu0 %v1116_v8  ;;  %p1284_p0 = por %p1283_p8, %p1282_p13 }
  0xc6   : > { %991 = vmatprep.subr.bf16.mxu0 %v1362_v0 }
  0xc7   : > { %1010 = vmatpush3.bf16.msra.mxu1 %v1124_v16  ;;  %p1285_p6 = pnand %p1284_p0, %p1278_p4 }
  0xc8   : > { %1011 = vmatprep.subr.bf16.mxu1 %v1362_v0 }
  0xc9   : > { %992 = vmatpush3.bf16.msra.mxu0 %v1117_v9 }
  0xca   : > { %993 = vmatprep.subr.bf16.mxu0 %v1362_v0 }
  0xcb   : > { %1012 = vmatpush3.bf16.msra.mxu1 %v1125_v17 }
  0xcc   : > { %1013 = vmatprep.subr.bf16.mxu1 %v1362_v0 }
  0xcd   : > { %994 = vmatpush3.bf16.msra.mxu0 %v1118_v10 }
  0xce   : > { %995 = vmatprep.subr.bf16.mxu0 %v1362_v0 }
  0xcf   : > { %1014 = vmatpush3.bf16.msra.mxu1 %v1126_v18 }
  0xd0   : > { %1015 = vmatprep.subr.bf16.mxu1 %v1362_v0 }
  0xd1   : > { %996 = vmatpush3.bf16.msra.mxu0 %v1119_v11 }
  0xd2   : > { %997 = vmatprep.subr.bf16.mxu0 %v1362_v0 }
  0xd3   : > { %1016 = vmatpush3.bf16.msra.mxu1 %v1127_v19 }
  0xd4   : > { %1017 = vmatprep.subr.bf16.mxu1 %v1362_v0 }
  0xd5   : > { %998 = vmatpush3.bf16.msra.mxu0 %v1120_v12 }
  0xd6   : > { %999 = vmatprep.subr.bf16.mxu0 %v1362_v0 }
  0xd7   : > { %1018 = vmatpush3.bf16.msra.mxu1 %v1128_v20 }
  0xd8   : > { %1019 = vmatprep.subr.bf16.mxu1 %v1362_v0 }
  0xd9   : > { %1000 = vmatpush3.bf16.msra.mxu0 %v1121_v13 }
  0xda   : > { %1001 = vmatprep.subr.bf16.mxu0 %v1362_v0 }
  0xdb   : > { %1020 = vmatpush3.bf16.msra.mxu1 %v1129_v34 }
  0xdc   : > { %1021 = vmatprep.subr.bf16.mxu1 %v1362_v0 }
  0xdd   : > { %1002 = vmatpush3.bf16.msra.mxu0 %v1122_v14 }
  0xdf   : > { %1022 = vmatpush3.bf16.msra.mxu1 %v1130_v35 }
 0x193   : > { %v481_v21 = vpop.f32.mrb[0].mxu0  ;;  %v530_v22 = vpop.f32.mrb[0].mxu1 }
 0x194   : > { %v979_v24 = vpop.f32.mrb[1].mxu0  ;;  %v531_v25 = vadd.f32 %v530_v22, %v481_v21  ;;  %v985_v26 = vpop.f32.mrb[1].mxu1 }
 0x195   : > { %v484_v27 = vpop.f32.mrb[2].mxu0  ;;  %v533_v28 = vpop.f32.mrb[2].mxu1 }
 0x196   : > { %v980_v29 = vpop.f32.mrb[3].mxu0  ;;  %v543_v30 = vadd.f32 %v929_v23, %v531_v25  ;;  %v986_v31 = vpop.f32.mrb[3].mxu1 }
 0x198   : > { %v544_v32 = vmax.f32 %v543_v30, 0.0 }
 0x19a   : > { %v545_v33 = vpack.c.bf16 %v544_v32, %v544_v32 }
 0x19c   : > { %1004 = vmatmul.mubr.bf16.vlgmr.msra.gmra.mrb[4].mxu0 %v545_v33 }
 0x26f   : > { %v651_v37 = vpop.f32.mrb[4].mxu0 }
 0x270   : > { %v652_v38 = vadd.f32 %v930_v36, %v651_v37  ;;  %v1005_v39 = vpop.f32.mrb[5].mxu0 }
 0x271   : > { %v654_v40 = vpop.f32.mrb[6].mxu0 }
 0x272   : > { %v657_v41 = vmax.f32 %v652_v38, 0.0  ;;  %v1006_v42 = vpop.f32.mrb[7].mxu0 }
 0x274   : > { %v658_v43 = vpack.c.bf16 %v657_v41, %v657_v41 }
 0x276   : > { %1024 = vmatmul.mubr.bf16.vlgmr.msra.gmra.mrb[4].mxu1 %v658_v43 }
 0x349   : > { %v764_v45 = vpop.f32.mrb[4].mxu1 }
 0x34a   : > { %v765_v46 = vadd.f32 %v939_v44, %v764_v45  ;;  %v1025_v47 = vpop.f32.mrb[5].mxu1 }
 0x34b   : > { %v767_v48 = vpop.f32.mrb[6].mxu1 }
 0x34c   : > { %v948_v49 = vclamps-f32 %v765_v46, 20.0  ;;  %v1026_v50 = vpop.f32.mrb[7].mxu1 }
 0x34e   : > { %772 = vst [vmem:[%s427_s23] sm:$0xff] %v948_v49 }
 0x34f   : > { %1288 = shalt.err (!%p1285_p6)
}
 0x350   : > { %s1289_s2 = scalar_lea.hbm %s1710_s19, 128  ;;  %s1293_s29 = scalar_lea.hbm %s1793_s17, 1536 }
 0x351   : > { %p1290_p12 = scmp.ne.s32.totalorder %s1710_s19, %s1289_s2  ;;  %p1294_p9 = scmp.lt.u32.totalorder %s1710_s19, %s1793_s17 }
 0x352   : > { %p1295_p3 = scmp.lt.u32.totalorder %s1293_s29, %s1289_s2  ;;  %p1297_p11 = scmp.lt.u32.totalorder %s1289_s2, %s1710_s19 }
 0x353   : > { %p1291_p5 = pnand %p1290_p12, %p1794_p1 }
 0x354   : > { %p1296_p7 = por %p1295_p3, %p1294_p9 }
 0x355   : > { %p1292_p10 = pneg %p1291_p5 }
 0x356   : > { %p1298_p2 = por %p1297_p11, %p1296_p7 }
 0x358   : > { %p1299_p4 = pnand %p1298_p2, %p1292_p10 }
 0x35a   : > { %1302 = shalt.err (!%p1299_p4)
}
 0x35b   : > { %1043 = dma.vmem_to_hbm [thread:$0]  (%p1794_p1), %s1712_s30, 128, %s1710_s19, %s774_s20  }
 0x35c PF: > { %s1795_s24 = sld [smem:[#allocation17_spill]]  ;;  %s1796_s18 = sld [smem:[#allocation18_spill]] }
 0x35d   : > { %p1073_p13 = scmp.ge.s32.totalorder %s1353_s12, 2 }
 0x362   : > { %s799_s23 = sand.u32 1, %s1795_s24   ;;  %p1797_p8 = scmp.ne.s32.totalorder %s1796_s18, 0 }
 0x363   : > { %s800_s26 = scalar_lea.sflag [#allocation4], %s799_s23 }
 0x364   : > { %p1063_p0 = pnand %p1073_p13, %p1797_p8 }
 0x366   : > { %1336 = dma.done.wait (!%p1063_p0), %s800_s26, 128  }
 0x367   : > { %1338 = vsyncadd (!%p1063_p0), %s800_s26, 4294967168  ;;  %p26_p6 = scmp.ge.s32.totalorder %s1554_s14, 14   ;;  %s1798_s30 = smov %s1345_s10 }
 0x368   : > { %s1799_s10 = smov %s1349_s11  ;;  %s1800_s11 = smov %s1564_s16 }
 0x369   : > { %s1801_s12 = smov %s1554_s14  ;;  %28 = sbr.rel (!%p26_p6) target bundleno = 13 (0xd), region = 126 }
 0x370   :  { %805 = vsyncpa [#allocation3], 1 }
 0x371   :  { %807 = vsyncpa [#allocation3 + $0x1], 1 }
 0x372   :  { %808 = vsyncpa [#allocation6], 1 }
 0x373   :  { %810 = vsyncpa [#allocation6 + $0x1], 1 }
 0x374   :  { %811 = vsyncpa [#allocation9], 1 }
 0x375   :  { %812 = vsyncpa [#allocation4], 1 }
 0x376   :  { %814 = vsyncpa [#allocation4 + $0x1], 1 }

</bundles_post_ra>
